<compile_context>
chip_gen: v7x
topology: tpu7x:2x2x1
jax: 0.10.0
libtpu: 0.0.40
codegen_flags: <defaults>
</compile_context>

<pallas_src>
import jax
import jax.numpy as jnp
from jax import lax
from jax.experimental import pallas as pl
from jax.experimental.pallas import tpu as pltpu
import numpy as np

GN_EPS = 1e-5


def _sigmoid(x):
    return 1.0 / (1.0 + jnp.exp(-x))


def _make_down_block_kernel(Cin, Cout, Hp, Wp):
    S = Hp * Wp

    def kernel(x_ref, g_ref, b_ref, wtap_ref, wp_ref, bp_ref, t_ref, o_ref):
        # x_ref: (1, Cin, S) pooled activations; channels on sublanes, pixels on lanes.
        p = x_ref[0].astype(jnp.float32)                       # (Cin, S)

        # ---- GroupNorm(num_groups=1): one-pass stats over the whole (Cin, S) tile ----
        n = float(Cin * S)
        s1 = jnp.sum(p)
        s2 = jnp.sum(p * p)
        mean = s1 / n
        var = jnp.maximum(s2 / n - mean * mean, 0.0)           # biased var (PyTorch GN)
        inv_std = lax.rsqrt(var + GN_EPS)
        xn = (p - mean) * inv_std
        xn = xn * g_ref[...] + b_ref[...]                      # per-channel (Cin,1) affine
        h = xn * _sigmoid(xn)                                  # swish

        # ---- 3x3 conv (pad=1) as 9 masked lane-rolls + accumulating MXU matmuls ----
        s_idx = lax.broadcasted_iota(jnp.int32, (Cin, S), 1)   # flattened pixel index
        x_idx = s_idx % Wp                                     # column within the row
        conv = jnp.zeros((Cout, S), jnp.float32)
        for tap in range(9):
            dy, dx = tap // 3 - 1, tap % 3 - 1
            k = dy * Wp + dx
            # want shifted[c, s] == h[c, s + k]  (wrapped lanes are masked to zero below)
            shifted = h if k == 0 else pltpu.roll(h, shift=(-k) % S, axis=1)
            conds = []
            if dy == -1:
                conds.append(s_idx >= Wp)                      # needs row y-1 >= 0
            elif dy == 1:
                conds.append(s_idx < (Hp - 1) * Wp)            # needs row y+1 <= Hp-1
            if dx == -1:
                conds.append(x_idx >= 1)                       # needs col x-1 >= 0
            elif dx == 1:
                conds.append(x_idx < Wp - 1)                   # needs col x+1 <= Wp-1
            if conds:
                mask = conds[0]
                for c in conds[1:]:
                    mask = jnp.logical_and(mask, c)
                shifted = jnp.where(mask, shifted, 0.0)
            conv = conv + jnp.dot(wtap_ref[tap], shifted,      # (Cout,Cin) @ (Cin,S)
                                  preferred_element_type=jnp.float32)

        # ---- conditional-embedding projection + swish, broadcast-add as a column ----
        tp = jnp.sum(wp_ref[...] * t_ref[0], axis=1, keepdims=True) + bp_ref[...]  # (Cout,1)
        tp = tp * _sigmoid(tp)
        o_ref[0] = (conv + tp).astype(o_ref.dtype)

    return kernel


def down_forward(x_nchw, t, params):
    gn_w, gn_b, conv_w, proj_w, proj_b = (
        params["gn_w"], params["gn_b"], params["conv_w"], params["proj_w"], params["proj_b"]
    )
    B, Cin, H, W = x_nchw.shape
    Cout = conv_w.shape[0]
    emb = proj_w.shape[1]
    Hp, Wp = H // 2, W // 2
    S = Hp * Wp

    # MaxPool2d(2): pure layout glue in XLA; output is 4x smaller than the input.
    pooled = jnp.max(x_nchw.reshape(B, Cin, Hp, 2, Wp, 2), axis=(3, 5))
    pooled = pooled.reshape(B, Cin, S)                         # lane-dense (C, H*W)

    # conv weight (Cout, Cin, 3, 3) -> per-tap matrices (9, Cout, Cin), tap = ky*3 + kx
    wtaps = jnp.transpose(conv_w, (2, 3, 0, 1)).reshape(9, Cout, Cin)
    g = gn_w.reshape(Cin, 1)
    b = gn_b.reshape(Cin, 1)
    bp = proj_b.reshape(Cout, 1)
    t3 = t.reshape(B, 1, emb)

    kernel = _make_down_block_kernel(Cin, Cout, Hp, Wp)
    out = pl.pallas_call(
        kernel,
        out_shape=jax.ShapeDtypeStruct((B, Cout, S), x_nchw.dtype),
        grid_spec=pltpu.PrefetchScalarGridSpec(
            num_scalar_prefetch=0,
            grid=(B,),
            in_specs=[
                pl.BlockSpec((1, Cin, S), lambda bb: (bb, 0, 0)),     # pooled activations
                pl.BlockSpec((Cin, 1), lambda bb: (0, 0)),            # GN gamma
                pl.BlockSpec((Cin, 1), lambda bb: (0, 0)),            # GN beta
                pl.BlockSpec((9, Cout, Cin), lambda bb: (0, 0, 0)),   # conv taps
                pl.BlockSpec((Cout, emb), lambda bb: (0, 0)),         # proj weight
                pl.BlockSpec((Cout, 1), lambda bb: (0, 0)),           # proj bias
                pl.BlockSpec((1, 1, emb), lambda bb: (bb, 0, 0)),     # t embedding
            ],
            out_specs=pl.BlockSpec((1, Cout, S), lambda bb: (bb, 0, 0)),
        ),
        compiler_params=pltpu.CompilerParams(dimension_semantics=("parallel",)),
    )(pooled, g, b, wtaps, proj_w, bp, t3)

    return out.reshape(B, Cout, Hp, Wp)                        # already NCHW, no transpose


def reference(x, t, params):
    """Pure-JAX reference matching PyTorch `Down` semantics (NCHW)."""
    gn_w, gn_b, conv_w, proj_w, proj_b = (
        params["gn_w"], params["gn_b"], params["conv_w"], params["proj_w"], params["proj_b"]
    )
    B, Cin, H, W = x.shape
    Hp, Wp = H // 2, W // 2
    xp = jnp.max(x.reshape(B, Cin, Hp, 2, Wp, 2), axis=(3, 5))
    mean = jnp.mean(xp, axis=(1, 2, 3), keepdims=True)
    var = jnp.mean(jnp.square(xp - mean), axis=(1, 2, 3), keepdims=True)
    xn = (xp - mean) * lax.rsqrt(var + GN_EPS)
    xn = xn * gn_w[None, :, None, None] + gn_b[None, :, None, None]
    h = xn * jax.nn.sigmoid(xn)
    h = lax.conv_general_dilated(
        h, conv_w, window_strides=(1, 1), padding="SAME",
        dimension_numbers=("NCHW", "OIHW", "NCHW"))
    tp = t @ proj_w.T + proj_b
    tp = tp * jax.nn.sigmoid(tp)
    return h + tp[:, :, None, None]


if __name__ == "__main__":
    B, Cin, Cout, H, W, emb = 2, 4, 8, 32, 32, 32   # post-pool spatial = 16x16 = 256 lanes

    key = jax.random.PRNGKey(0)
    ks = jax.random.split(key, 7)
    x = jax.random.normal(ks[0], (B, Cin, H, W), jnp.float32)
    t = jax.random.normal(ks[1], (B, emb), jnp.float32)
    params = dict(
        gn_w=1.0 + 0.1 * jax.random.normal(ks[2], (Cin,), jnp.float32),
        gn_b=0.1 * jax.random.normal(ks[3], (Cin,), jnp.float32),
        conv_w=0.1 * jax.random.normal(ks[4], (Cout, Cin, 3, 3), jnp.float32),
        proj_w=0.1 * jax.random.normal(ks[5], (Cout, emb), jnp.float32),
        proj_b=0.1 * jax.random.normal(ks[6], (Cout,), jnp.float32),
    )

    out = jax.block_until_ready(jax.jit(down_forward)(x, t, params))
    assert out.shape == (B, Cout, H // 2, W // 2) and out.dtype == jnp.float32

    ref = jax.block_until_ready(reference(x, t, params))
    np.testing.assert_allclose(np.asarray(out), np.asarray(ref), rtol=2e-4, atol=2e-4)

    print("KERNEL_OK")
</pallas_src>

<mosaic_0001>
module attributes {stable_mosaic.version = 11 : i64} {
  func.func @kernel(%arg0: i32, %arg1: memref<1x4x256xf32, #tpu.memory_space<vmem>>, %arg2: memref<4x1xf32, #tpu.memory_space<vmem>>, %arg3: memref<4x1xf32, #tpu.memory_space<vmem>>, %arg4: memref<9x8x4xf32, #tpu.memory_space<vmem>>, %arg5: memref<8x32xf32, #tpu.memory_space<vmem>>, %arg6: memref<8x1xf32, #tpu.memory_space<vmem>>, %arg7: memref<1x1x32xf32, #tpu.memory_space<vmem>>, %arg8: memref<1x8x256xf32, #tpu.memory_space<vmem>>) attributes {dimension_semantics = [#tpu.dimension_semantics<parallel>], iteration_bounds = array<i64: 2>, scalar_prefetch = 0 : i64, scratch_operands = 0 : i64, tpu.core_type = #tpu.core_type<tc>, window_params = [{transform_indices = @transform_0, window_bounds = array<i64: 1, 4, 256>}, {pipeline_mode = #tpu.pipeline_mode<synchronous>, transform_indices = @transform_1, window_bounds = array<i64: 4, 1>}, {pipeline_mode = #tpu.pipeline_mode<synchronous>, transform_indices = @transform_2, window_bounds = array<i64: 4, 1>}, {pipeline_mode = #tpu.pipeline_mode<synchronous>, transform_indices = @transform_3, window_bounds = array<i64: 9, 8, 4>}, {pipeline_mode = #tpu.pipeline_mode<synchronous>, transform_indices = @transform_4, window_bounds = array<i64: 8, 32>}, {pipeline_mode = #tpu.pipeline_mode<synchronous>, transform_indices = @transform_5, window_bounds = array<i64: 8, 1>}, {transform_indices = @transform_6, window_bounds = array<i64: 1, 1, 32>}, {transform_indices = @transform_7, window_bounds = array<i64: 1, 8, 256>}]} {
    %c0 = arith.constant 0 : index
    %c0_0 = arith.constant 0 : index
    %c0_1 = arith.constant 0 : index
    %0 = vector.load %arg1[%c0, %c0_0, %c0_1] : memref<1x4x256xf32, #tpu.memory_space<vmem>>, vector<1x4x256xf32>
    %1 = vector.shape_cast %0 : vector<1x4x256xf32> to vector<4x256xf32>
    %2 = vector.shape_cast %1 : vector<4x256xf32> to vector<1x4x256xf32>
    %cst = arith.constant dense<0.000000e+00> : vector<1xf32>
    %3 = vector.multi_reduction <add>, %2, %cst [1, 2] : vector<1x4x256xf32> to vector<1xf32>
    %4 = vector.shape_cast %3 : vector<1xf32> to vector<1x1x1xf32>
    %5 = vector.extract %4[0, 0, 0] : f32 from vector<1x1x1xf32>
    %6 = arith.mulf %1, %1 : vector<4x256xf32>
    %7 = vector.shape_cast %6 : vector<4x256xf32> to vector<1x4x256xf32>
    %cst_2 = arith.constant dense<0.000000e+00> : vector<1xf32>
    %8 = vector.multi_reduction <add>, %7, %cst_2 [1, 2] : vector<1x4x256xf32> to vector<1xf32>
    %9 = vector.shape_cast %8 : vector<1xf32> to vector<1x1x1xf32>
    %10 = vector.extract %9[0, 0, 0] : f32 from vector<1x1x1xf32>
    %cst_3 = arith.constant 1.024000e+03 : f32
    %11 = arith.divf %5, %cst_3 : f32
    %cst_4 = arith.constant 1.024000e+03 : f32
    %12 = arith.divf %10, %cst_4 : f32
    %13 = arith.mulf %11, %11 : f32
    %14 = arith.subf %12, %13 : f32
    %cst_5 = arith.constant 0.000000e+00 : f32
    %15 = arith.maximumf %14, %cst_5 : f32
    %cst_6 = arith.constant 9.99999974E-6 : f32
    %16 = arith.addf %15, %cst_6 : f32
    %17 = math.rsqrt %16 : f32
    %18 = vector.broadcast %11 : f32 to vector<4x256xf32>
    %19 = arith.subf %1, %18 : vector<4x256xf32>
    %20 = vector.broadcast %17 : f32 to vector<4x256xf32>
    %21 = arith.mulf %19, %20 : vector<4x256xf32>
    %c0_7 = arith.constant 0 : index
    %c0_8 = arith.constant 0 : index
    %22 = vector.load %arg2[%c0_7, %c0_8] : memref<4x1xf32, #tpu.memory_space<vmem>>, vector<4x1xf32>
    %23 = vector.broadcast %22 : vector<4x1xf32> to vector<4x256xf32>
    %24 = arith.mulf %21, %23 : vector<4x256xf32>
    %c0_9 = arith.constant 0 : index
    %c0_10 = arith.constant 0 : index
    %25 = vector.load %arg3[%c0_9, %c0_10] : memref<4x1xf32, #tpu.memory_space<vmem>>, vector<4x1xf32>
    %26 = vector.broadcast %25 : vector<4x1xf32> to vector<4x256xf32>
    %27 = arith.addf %24, %26 : vector<4x256xf32>
    %cst_11 = arith.constant 0.000000e+00 : f32
    %28 = vector.broadcast %cst_11 : f32 to vector<4x256xf32>
    %29 = arith.subf %28, %27 : vector<4x256xf32>
    %30 = math.exp %29 : vector<4x256xf32>
    %cst_12 = arith.constant 1.000000e+00 : f32
    %31 = vector.broadcast %cst_12 : f32 to vector<4x256xf32>
    %32 = arith.addf %31, %30 : vector<4x256xf32>
    %cst_13 = arith.constant 1.000000e+00 : f32
    %33 = vector.broadcast %cst_13 : f32 to vector<4x256xf32>
    %34 = arith.divf %33, %32 : vector<4x256xf32>
    %35 = arith.mulf %27, %34 : vector<4x256xf32>
    %36 = tpu.iota {dimensions = array<i32: 1>} : vector<4x256xi32>
    %c16_i32 = arith.constant 16 : i32
    %c0_i32 = arith.constant 0 : i32
    %37 = arith.cmpi eq, %c16_i32, %c0_i32 : i32
    %c1_i32 = arith.constant 1 : i32
    %38 = arith.select %37, %c1_i32, %c16_i32 : i32
    %39 = vector.broadcast %38 : i32 to vector<4x256xi32>
    %40 = arith.remsi %36, %39 : vector<4x256xi32>
    %c0_i32_14 = arith.constant 0 : i32
    %41 = vector.broadcast %c0_i32_14 : i32 to vector<4x256xi32>
    %42 = arith.cmpi ne, %40, %41 : vector<4x256xi32>
    %c0_i32_15 = arith.constant 0 : i32
    %43 = vector.broadcast %c0_i32_15 : i32 to vector<4x256xi32>
    %44 = arith.cmpi slt, %40, %43 : vector<4x256xi32>
    %c0_i32_16 = arith.constant 0 : i32
    %45 = arith.cmpi slt, %38, %c0_i32_16 : i32
    %46 = vector.broadcast %45 : i1 to vector<4x256xi1>
    %47 = vector.broadcast %46 : vector<4x256xi1> to vector<4x256xi1>
    %48 = arith.xori %44, %47 : vector<4x256xi1>
    %49 = arith.andi %48, %42 : vector<4x256xi1>
    %50 = vector.broadcast %38 : i32 to vector<4x256xi32>
    %51 = arith.addi %40, %50 : vector<4x256xi32>
    %52 = arith.select %49, %51, %40 : vector<4x256xi1>, vector<4x256xi32>
    %cst_17 = arith.constant 0.000000e+00 : f32
    %53 = vector.broadcast %cst_17 : f32 to vector<8x256xf32>
    %c17_i32 = arith.constant 17 : i32
    %54 = tpu.dynamic_rotate %35 by %c17_i32 dim 1 : vector<4x256xf32>, i32 -> vector<4x256xf32>
    %c16_i32_18 = arith.constant 16 : i32
    %55 = vector.broadcast %c16_i32_18 : i32 to vector<4x256xi32>
    %56 = arith.cmpi sge, %36, %55 : vector<4x256xi32>
    %c1_i32_19 = arith.constant 1 : i32
    %57 = vector.broadcast %c1_i32_19 : i32 to vector<4x256xi32>
    %58 = arith.cmpi sge, %52, %57 : vector<4x256xi32>
    %59 = arith.andi %56, %58 : vector<4x256xi1>
    %cst_20 = arith.constant 0.000000e+00 : f32
    %60 = vector.broadcast %cst_20 : f32 to vector<4x256xf32>
    %61 = arith.select %59, %54, %60 : vector<4x256xi1>, vector<4x256xf32>
    %c0_21 = arith.constant 0 : index
    %c0_22 = arith.constant 0 : index
    %c0_23 = arith.constant 0 : index
    %62 = vector.load %arg4[%c0_21, %c0_22, %c0_23] : memref<9x8x4xf32, #tpu.memory_space<vmem>>, vector<1x8x4xf32>
    %63 = vector.shape_cast %62 : vector<1x8x4xf32> to vector<8x4xf32>
    %cst_24 = arith.constant dense<0.000000e+00> : vector<8x256xf32>
    %64 = tpu.matmul %63, %61, %cst_24 {dimension_numbers = #tpu.dot_dimension_numbers<[1], [0], [0], [1], [0, 0, 1, 1], [], []>} : vector<8x4xf32>, vector<4x256xf32>, vector<8x256xf32> -> vector<8x256xf32>
    %65 = arith.addf %53, %64 : vector<8x256xf32>
    %c16_i32_25 = arith.constant 16 : i32
    %66 = tpu.dynamic_rotate %35 by %c16_i32_25 dim 1 : vector<4x256xf32>, i32 -> vector<4x256xf32>
    %c16_i32_26 = arith.constant 16 : i32
    %67 = vector.broadcast %c16_i32_26 : i32 to vector<4x256xi32>
    %68 = arith.cmpi sge, %36, %67 : vector<4x256xi32>
    %cst_27 = arith.constant 0.000000e+00 : f32
    %69 = vector.broadcast %cst_27 : f32 to vector<4x256xf32>
    %70 = arith.select %68, %66, %69 : vector<4x256xi1>, vector<4x256xf32>
    %c1 = arith.constant 1 : index
    %c0_28 = arith.constant 0 : index
    %c0_29 = arith.constant 0 : index
    %71 = vector.load %arg4[%c1, %c0_28, %c0_29] : memref<9x8x4xf32, #tpu.memory_space<vmem>>, vector<1x8x4xf32>
    %72 = vector.shape_cast %71 : vector<1x8x4xf32> to vector<8x4xf32>
    %cst_30 = arith.constant dense<0.000000e+00> : vector<8x256xf32>
    %73 = tpu.matmul %72, %70, %cst_30 {dimension_numbers = #tpu.dot_dimension_numbers<[1], [0], [0], [1], [0, 0, 1, 1], [], []>} : vector<8x4xf32>, vector<4x256xf32>, vector<8x256xf32> -> vector<8x256xf32>
    %74 = arith.addf %65, %73 : vector<8x256xf32>
    %c15_i32 = arith.constant 15 : i32
    %75 = tpu.dynamic_rotate %35 by %c15_i32 dim 1 : vector<4x256xf32>, i32 -> vector<4x256xf32>
    %c16_i32_31 = arith.constant 16 : i32
    %76 = vector.broadcast %c16_i32_31 : i32 to vector<4x256xi32>
    %77 = arith.cmpi sge, %36, %76 : vector<4x256xi32>
    %c15_i32_32 = arith.constant 15 : i32
    %78 = vector.broadcast %c15_i32_32 : i32 to vector<4x256xi32>
    %79 = arith.cmpi slt, %52, %78 : vector<4x256xi32>
    %80 = arith.andi %77, %79 : vector<4x256xi1>
    %cst_33 = arith.constant 0.000000e+00 : f32
    %81 = vector.broadcast %cst_33 : f32 to vector<4x256xf32>
    %82 = arith.select %80, %75, %81 : vector<4x256xi1>, vector<4x256xf32>
    %c2 = arith.constant 2 : index
    %c0_34 = arith.constant 0 : index
    %c0_35 = arith.constant 0 : index
    %83 = vector.load %arg4[%c2, %c0_34, %c0_35] : memref<9x8x4xf32, #tpu.memory_space<vmem>>, vector<1x8x4xf32>
    %84 = vector.shape_cast %83 : vector<1x8x4xf32> to vector<8x4xf32>
    %cst_36 = arith.constant dense<0.000000e+00> : vector<8x256xf32>
    %85 = tpu.matmul %84, %82, %cst_36 {dimension_numbers = #tpu.dot_dimension_numbers<[1], [0], [0], [1], [0, 0, 1, 1], [], []>} : vector<8x4xf32>, vector<4x256xf32>, vector<8x256xf32> -> vector<8x256xf32>
    %86 = arith.addf %74, %85 : vector<8x256xf32>
    %c1_i32_37 = arith.constant 1 : i32
    %87 = tpu.dynamic_rotate %35 by %c1_i32_37 dim 1 : vector<4x256xf32>, i32 -> vector<4x256xf32>
    %c1_i32_38 = arith.constant 1 : i32
    %88 = vector.broadcast %c1_i32_38 : i32 to vector<4x256xi32>
    %89 = arith.cmpi sge, %52, %88 : vector<4x256xi32>
    %cst_39 = arith.constant 0.000000e+00 : f32
    %90 = vector.broadcast %cst_39 : f32 to vector<4x256xf32>
    %91 = arith.select %89, %87, %90 : vector<4x256xi1>, vector<4x256xf32>
    %c3 = arith.constant 3 : index
    %c0_40 = arith.constant 0 : index
    %c0_41 = arith.constant 0 : index
    %92 = vector.load %arg4[%c3, %c0_40, %c0_41] : memref<9x8x4xf32, #tpu.memory_space<vmem>>, vector<1x8x4xf32>
    %93 = vector.shape_cast %92 : vector<1x8x4xf32> to vector<8x4xf32>
    %cst_42 = arith.constant dense<0.000000e+00> : vector<8x256xf32>
    %94 = tpu.matmul %93, %91, %cst_42 {dimension_numbers = #tpu.dot_dimension_numbers<[1], [0], [0], [1], [0, 0, 1, 1], [], []>} : vector<8x4xf32>, vector<4x256xf32>, vector<8x256xf32> -> vector<8x256xf32>
    %95 = arith.addf %86, %94 : vector<8x256xf32>
    %c4 = arith.constant 4 : index
    %c0_43 = arith.constant 0 : index
    %c0_44 = arith.constant 0 : index
    %96 = vector.load %arg4[%c4, %c0_43, %c0_44] : memref<9x8x4xf32, #tpu.memory_space<vmem>>, vector<1x8x4xf32>
    %97 = vector.shape_cast %96 : vector<1x8x4xf32> to vector<8x4xf32>
    %cst_45 = arith.constant dense<0.000000e+00> : vector<8x256xf32>
    %98 = tpu.matmul %97, %35, %cst_45 {dimension_numbers = #tpu.dot_dimension_numbers<[1], [0], [0], [1], [0, 0, 1, 1], [], []>} : vector<8x4xf32>, vector<4x256xf32>, vector<8x256xf32> -> vector<8x256xf32>
    %99 = arith.addf %95, %98 : vector<8x256xf32>
    %c255_i32 = arith.constant 255 : i32
    %100 = tpu.dynamic_rotate %35 by %c255_i32 dim 1 : vector<4x256xf32>, i32 -> vector<4x256xf32>
    %c15_i32_46 = arith.constant 15 : i32
    %101 = vector.broadcast %c15_i32_46 : i32 to vector<4x256xi32>
    %102 = arith.cmpi slt, %52, %101 : vector<4x256xi32>
    %cst_47 = arith.constant 0.000000e+00 : f32
    %103 = vector.broadcast %cst_47 : f32 to vector<4x256xf32>
    %104 = arith.select %102, %100, %103 : vector<4x256xi1>, vector<4x256xf32>
    %c5 = arith.constant 5 : index
    %c0_48 = arith.constant 0 : index
    %c0_49 = arith.constant 0 : index
    %105 = vector.load %arg4[%c5, %c0_48, %c0_49] : memref<9x8x4xf32, #tpu.memory_space<vmem>>, vector<1x8x4xf32>
    %106 = vector.shape_cast %105 : vector<1x8x4xf32> to vector<8x4xf32>
    %cst_50 = arith.constant dense<0.000000e+00> : vector<8x256xf32>
    %107 = tpu.matmul %106, %104, %cst_50 {dimension_numbers = #tpu.dot_dimension_numbers<[1], [0], [0], [1], [0, 0, 1, 1], [], []>} : vector<8x4xf32>, vector<4x256xf32>, vector<8x256xf32> -> vector<8x256xf32>
    %108 = arith.addf %99, %107 : vector<8x256xf32>
    %c241_i32 = arith.constant 241 : i32
    %109 = tpu.dynamic_rotate %35 by %c241_i32 dim 1 : vector<4x256xf32>, i32 -> vector<4x256xf32>
    %c240_i32 = arith.constant 240 : i32
    %110 = vector.broadcast %c240_i32 : i32 to vector<4x256xi32>
    %111 = arith.cmpi slt, %36, %110 : vector<4x256xi32>
    %c1_i32_51 = arith.constant 1 : i32
    %112 = vector.broadcast %c1_i32_51 : i32 to vector<4x256xi32>
    %113 = arith.cmpi sge, %52, %112 : vector<4x256xi32>
    %114 = arith.andi %111, %113 : vector<4x256xi1>
    %cst_52 = arith.constant 0.000000e+00 : f32
    %115 = vector.broadcast %cst_52 : f32 to vector<4x256xf32>
    %116 = arith.select %114, %109, %115 : vector<4x256xi1>, vector<4x256xf32>
    %c6 = arith.constant 6 : index
    %c0_53 = arith.constant 0 : index
    %c0_54 = arith.constant 0 : index
    %117 = vector.load %arg4[%c6, %c0_53, %c0_54] : memref<9x8x4xf32, #tpu.memory_space<vmem>>, vector<1x8x4xf32>
    %118 = vector.shape_cast %117 : vector<1x8x4xf32> to vector<8x4xf32>
    %cst_55 = arith.constant dense<0.000000e+00> : vector<8x256xf32>
    %119 = tpu.matmul %118, %116, %cst_55 {dimension_numbers = #tpu.dot_dimension_numbers<[1], [0], [0], [1], [0, 0, 1, 1], [], []>} : vector<8x4xf32>, vector<4x256xf32>, vector<8x256xf32> -> vector<8x256xf32>
    %120 = arith.addf %108, %119 : vector<8x256xf32>
    %c240_i32_56 = arith.constant 240 : i32
    %121 = tpu.dynamic_rotate %35 by %c240_i32_56 dim 1 : vector<4x256xf32>, i32 -> vector<4x256xf32>
    %c240_i32_57 = arith.constant 240 : i32
    %122 = vector.broadcast %c240_i32_57 : i32 to vector<4x256xi32>
    %123 = arith.cmpi slt, %36, %122 : vector<4x256xi32>
    %cst_58 = arith.constant 0.000000e+00 : f32
    %124 = vector.broadcast %cst_58 : f32 to vector<4x256xf32>
    %125 = arith.select %123, %121, %124 : vector<4x256xi1>, vector<4x256xf32>
    %c7 = arith.constant 7 : index
    %c0_59 = arith.constant 0 : index
    %c0_60 = arith.constant 0 : index
    %126 = vector.load %arg4[%c7, %c0_59, %c0_60] : memref<9x8x4xf32, #tpu.memory_space<vmem>>, vector<1x8x4xf32>
    %127 = vector.shape_cast %126 : vector<1x8x4xf32> to vector<8x4xf32>
    %cst_61 = arith.constant dense<0.000000e+00> : vector<8x256xf32>
    %128 = tpu.matmul %127, %125, %cst_61 {dimension_numbers = #tpu.dot_dimension_numbers<[1], [0], [0], [1], [0, 0, 1, 1], [], []>} : vector<8x4xf32>, vector<4x256xf32>, vector<8x256xf32> -> vector<8x256xf32>
    %129 = arith.addf %120, %128 : vector<8x256xf32>
    %c239_i32 = arith.constant 239 : i32
    %130 = tpu.dynamic_rotate %35 by %c239_i32 dim 1 : vector<4x256xf32>, i32 -> vector<4x256xf32>
    %c240_i32_62 = arith.constant 240 : i32
    %131 = vector.broadcast %c240_i32_62 : i32 to vector<4x256xi32>
    %132 = arith.cmpi slt, %36, %131 : vector<4x256xi32>
    %c15_i32_63 = arith.constant 15 : i32
    %133 = vector.broadcast %c15_i32_63 : i32 to vector<4x256xi32>
    %134 = arith.cmpi slt, %52, %133 : vector<4x256xi32>
    %135 = arith.andi %132, %134 : vector<4x256xi1>
    %cst_64 = arith.constant 0.000000e+00 : f32
    %136 = vector.broadcast %cst_64 : f32 to vector<4x256xf32>
    %137 = arith.select %135, %130, %136 : vector<4x256xi1>, vector<4x256xf32>
    %c8 = arith.constant 8 : index
    %c0_65 = arith.constant 0 : index
    %c0_66 = arith.constant 0 : index
    %138 = vector.load %arg4[%c8, %c0_65, %c0_66] : memref<9x8x4xf32, #tpu.memory_space<vmem>>, vector<1x8x4xf32>
    %139 = vector.shape_cast %138 : vector<1x8x4xf32> to vector<8x4xf32>
    %cst_67 = arith.constant dense<0.000000e+00> : vector<8x256xf32>
    %140 = tpu.matmul %139, %137, %cst_67 {dimension_numbers = #tpu.dot_dimension_numbers<[1], [0], [0], [1], [0, 0, 1, 1], [], []>} : vector<8x4xf32>, vector<4x256xf32>, vector<8x256xf32> -> vector<8x256xf32>
    %141 = arith.addf %129, %140 : vector<8x256xf32>
    %c0_68 = arith.constant 0 : index
    %c0_69 = arith.constant 0 : index
    %142 = vector.load %arg5[%c0_68, %c0_69] : memref<8x32xf32, #tpu.memory_space<vmem>>, vector<8x32xf32>
    %c0_70 = arith.constant 0 : index
    %c0_71 = arith.constant 0 : index
    %c0_72 = arith.constant 0 : index
    %143 = vector.load %arg7[%c0_70, %c0_71, %c0_72] : memref<1x1x32xf32, #tpu.memory_space<vmem>>, vector<1x1x32xf32>
    %144 = vector.shape_cast %143 : vector<1x1x32xf32> to vector<1x32xf32>
    %145 = vector.broadcast %144 : vector<1x32xf32> to vector<8x32xf32>
    %146 = arith.mulf %142, %145 : vector<8x32xf32>
    %cst_73 = arith.constant dense<0.000000e+00> : vector<8xf32>
    %147 = vector.multi_reduction <add>, %146, %cst_73 [1] : vector<8x32xf32> to vector<8xf32>
    %148 = vector.shape_cast %147 : vector<8xf32> to vector<8x1xf32>
    %c0_74 = arith.constant 0 : index
    %c0_75 = arith.constant 0 : index
    %149 = vector.load %arg6[%c0_74, %c0_75] : memref<8x1xf32, #tpu.memory_space<vmem>>, vector<8x1xf32>
    %150 = arith.addf %148, %149 : vector<8x1xf32>
    %cst_76 = arith.constant 0.000000e+00 : f32
    %151 = vector.broadcast %cst_76 : f32 to vector<8x1xf32>
    %152 = arith.subf %151, %150 : vector<8x1xf32>
    %153 = math.exp %152 : vector<8x1xf32>
    %cst_77 = arith.constant 1.000000e+00 : f32
    %154 = vector.broadcast %cst_77 : f32 to vector<8x1xf32>
    %155 = arith.addf %154, %153 : vector<8x1xf32>
    %cst_78 = arith.constant 1.000000e+00 : f32
    %156 = vector.broadcast %cst_78 : f32 to vector<8x1xf32>
    %157 = arith.divf %156, %155 : vector<8x1xf32>
    %158 = arith.mulf %150, %157 : vector<8x1xf32>
    %159 = vector.broadcast %158 : vector<8x1xf32> to vector<8x256xf32>
    %160 = arith.addf %141, %159 : vector<8x256xf32>
    %c0_79 = arith.constant 0 : index
    %c0_80 = arith.constant 0 : index
    %c0_81 = arith.constant 0 : index
    %161 = vector.load %arg8[%c0_79, %c0_80, %c0_81] : memref<1x8x256xf32, #tpu.memory_space<vmem>>, vector<1x8x256xf32>
    %162 = vector.shape_cast %161 : vector<1x8x256xf32> to vector<8x256xf32>
    %163 = vector.shape_cast %160 : vector<8x256xf32> to vector<1x8x256xf32>
    tpu.vector_store %arg8[%c0_79, %c0_80, %c0_81], %163 {strides = array<i32>} : memref<1x8x256xf32, #tpu.memory_space<vmem>>, vector<1x8x256xf32>,
    return
  }
  func.func @transform_0(%arg0: i32) -> (i32, i32, i32) {
    %c0_i32 = arith.constant 0 : i32
    %c0_i32_0 = arith.constant 0 : i32
    %c0_i32_1 = arith.constant 0 : i32
    return %arg0, %c0_i32, %c0_i32_0 : i32, i32, i32
  }
  func.func @transform_1(%arg0: i32) -> (i32, i32) {
    %c0_i32 = arith.constant 0 : i32
    %c0_i32_0 = arith.constant 0 : i32
    %c0_i32_1 = arith.constant 0 : i32
    return %c0_i32, %c0_i32_0 : i32, i32
  }
  func.func @transform_2(%arg0: i32) -> (i32, i32) {
    %c0_i32 = arith.constant 0 : i32
    %c0_i32_0 = arith.constant 0 : i32
    %c0_i32_1 = arith.constant 0 : i32
    return %c0_i32, %c0_i32_0 : i32, i32
  }
  func.func @transform_3(%arg0: i32) -> (i32, i32, i32) {
    %c0_i32 = arith.constant 0 : i32
    %c0_i32_0 = arith.constant 0 : i32
    %c0_i32_1 = arith.constant 0 : i32
    %c0_i32_2 = arith.constant 0 : i32
    return %c0_i32, %c0_i32_0, %c0_i32_1 : i32, i32, i32
  }
  func.func @transform_4(%arg0: i32) -> (i32, i32) {
    %c0_i32 = arith.constant 0 : i32
    %c0_i32_0 = arith.constant 0 : i32
    %c0_i32_1 = arith.constant 0 : i32
    return %c0_i32, %c0_i32_0 : i32, i32
  }
  func.func @transform_5(%arg0: i32) -> (i32, i32) {
    %c0_i32 = arith.constant 0 : i32
    %c0_i32_0 = arith.constant 0 : i32
    %c0_i32_1 = arith.constant 0 : i32
    return %c0_i32, %c0_i32_0 : i32, i32
  }
  func.func @transform_6(%arg0: i32) -> (i32, i32, i32) {
    %c0_i32 = arith.constant 0 : i32
    %c0_i32_0 = arith.constant 0 : i32
    %c0_i32_1 = arith.constant 0 : i32
    return %arg0, %c0_i32, %c0_i32_0 : i32, i32, i32
  }
  func.func @transform_7(%arg0: i32) -> (i32, i32, i32) {
    %c0_i32 = arith.constant 0 : i32
    %c0_i32_0 = arith.constant 0 : i32
    %c0_i32_1 = arith.constant 0 : i32
    return %arg0, %c0_i32, %c0_i32_0 : i32, i32, i32
  }
}

</mosaic_0001>

<bundles_post_ra>
// kernel: down_forward.1
= control target key start
LH: loop header
LB: loop body
LE: loop exit
PB: predicated region body
PF: predicated region fallthrough
CT: control target
= control target key end

     0   :  { %s1505_s24 = smov 0   ;;  %s1680_s0 = inlined_call_operand.vmem [shape: f32[2,4,256], index: 0, kind: input, shape index: {}]   ;;  %s1681_s1 = inlined_call_operand.vmem [shape: f32[4,1], index: 1, kind: input, shape index: {}]   ;;  %s1682_s2 = inlined_call_operand.vmem [shape: f32[4,1], index: 2, kind: input, shape index: {}]   ;;  %s1683_s3 = inlined_call_operand.vmem [shape: f32[9,8,4], index: 3, kind: input, shape index: {}]   ;;  %s1684_s4 = inlined_call_operand.vmem [shape: f32[8,32], index: 4, kind: input, shape index: {}]   ;;  %s1685_s5 = inlined_call_operand.vmem [shape: f32[8,1], index: 5, kind: input, shape index: {}]   ;;  %s1686_s6 = inlined_call_operand.vmem [shape: f32[2,1,32], index: 6, kind: input, shape index: {}]   ;;  %s1687_s7 = inlined_call_operand.vmem [shape: f32[2,8,256], index: 7, kind: output, shape index: {}]  }
   0x1 LB: > { %s1341_s25 = sadd.s32 4294967295, %s1451_s24   ;;  %p1345_p0 = scmp.ge.s32.totalorder %s1451_s24, 1  ;;  %s1451_s24 = sphi %s1505_s24, %s17_s24  }
   0x2   : > { %p245_p1 = scmp.lt.s32.totalorder %s1451_s24, 3 }
   0x4   : > { %p246_p2 = pnand %p1345_p0, %p245_p1 }
   0x5   : > { %p280_p3 = scmp.lt.s32.totalorder (!%p246_p2), %s1341_s25, 1  ;;  %vm297_vm0 = vcmask (!%p246_p2), 1043456   ;;  %v1453_v10 = vmov (!%p246_p2), 0   ;;  %v343_v11 = vld [vmem:[%s1681_s1] sm:$0xf] (!%p246_p2)  ;;  %s1454_s17 = smov (!%p246_p2), 0.0   ;;  %v351_v31 = vlaneseq (!%p246_p2) }
   0x6   : > { %249 = sbr.rel (%p246_p2) target bundleno = 713 (0x2c9), region = 48  ;;  %1432 = vset.pattern.permute.xlu1 (!%p246_p2), %v1453_v10  ;;  %1433 = vset.pattern.permute.xlu0 (!%p246_p2), %v1453_v10  ;;  %v357_v12 = vld [vmem:[%s1682_s2] sm:$0xf] (!%p246_p2)  ;;  %v1455_v29 = vmov (!%p246_p2), 839922192   ;;  %v1456_v49 = vmov (!%p246_p2), 0.0  }
   0x7   : > { %346 = vperm.xlu1 (!%p246_p2), %1432, %v343_v11   ;;  %v349_v30 = vunpack.c.l.s4 (!%p246_p2), %v1455_v29  ;;  %v352_v33 = vshrl.u32 (!%p246_p2), %v351_v31, 7  ;;  %859 = vmatprep.mubr.f32.mxu0 (!%p246_p2), %v1456_v49  ;;  %s1457_s21 = smov (!%p246_p2), 16   ;;  %s1458_s22 = smov (!%p246_p2), 127   ;;  %vm435_vm1 = vcmask (!%p246_p2), 31744   ;;  %v1365_v53 = vld [vmem:[%s1683_s3 + $0x20] sm:$0xff] (!%p246_p2)  ;;  %vm1255_vm2 = vcmask (!%p246_p2), 261120  }
   0x8   : > { %509 = vmatprep.mubr.f32.mxu1 (!%p246_p2), %v1456_v49  ;;  %s1459_s27 = smov (!%p246_p2), 17   ;;  %s1460_s28 = smov (!%p246_p2), 113   ;;  %v1246_v54 = vld [vmem:[%s1684_s4] sm:$0xff] (!%p246_p2)  ;;  %v1547_v58 = vand.u32 (!%p246_p2), 127, %v351_v31 }
   0x9   : > { %v350_v32 = vunpack.c.0.s8 (!%p246_p2), %v349_v30  ;;  %s1462_s30 = smov (!%p246_p2), 112   ;;  %s1463_s8 = smov (!%p246_p2), 1   ;;  %v423_v29 = vld [vmem:[%s1683_s3] sm:$0xff] (!%p246_p2) }
   0xa   : > { %s1464_s9 = smov (!%p246_p2), 111   ;;  %v1550_v59 = vadd.s32 (!%p246_p2), 128, %v1547_v58  ;;  %v385_v61 = vand.u32 (!%p246_p2), 15, %v1547_v58  ;;  %vm872_vm3 = vcmp.lt.s32.totalorder (!%p246_p2), %v1547_v58, 127  ;;  %vm428_vm6 = vcmp.lt.s32.totalorder (!%p246_p2), %v1547_v58, 16 }
   0xb   : > { %360 = vperm.xlu1 (!%p246_p2), %1432, %v357_v12   ;;  %v353_v36 = vsub.s32 (!%p246_p2), %v350_v32, %v352_v33  ;;  %vm415_vm7 = vcmp.ge.s32.totalorder (!%p246_p2), %v1547_v58, 16  ;;  %vm965_vm10 = vcmp.lt.s32.totalorder (!%p246_p2), %v1547_v58, 113  ;;  %vm412_vm13 = vcmp.lt.s32.totalorder (!%p246_p2), %v1547_v58, 17 }
   0xc   : > { %v392_v62 = vand.u32 (!%p246_p2), 15, %v1550_v59  ;;  %vm1555_vm4 = vcmp.lt.s32.totalorder (!%p246_p2), %v385_v61, 15  ;;  %vm969_vm9 = vcmp.lt.s32.totalorder (!%p246_p2), %v1550_v59, 240  ;;  %vm1589_vm11 = vcmp.ge.s32.totalorder (!%p246_p2), %v385_v61, 1 }
   0xd   : > { %s1697_s25 = smov (!%p280_p3, %s1341_s25), 1  ;;  %vm419_vm14 = vmand %vm415_vm7, %vm1589_vm11  ;;  %vm600_vm15 = vcmp.lt.s32.totalorder %v1547_v58, 15 }
   0xe   : > { %s1388_s26 = sshll.u32 %s1697_s25, 3  ;;  %vm1559_vm5 = vcmp.lt.s32.totalorder %v392_v62, 15  ;;  %vm1574_vm8 = vcmp.ge.s32.totalorder %v392_v62, 1 }
   0xf   : > { %s284_s29 = scalar_lea.vmem %s1680_s0, %s1388_s26  ;;  %vm971_vm12 = vmand %vm969_vm9, %vm1574_vm8 }
  0x10   : > { %v293_v0 = vld [vmem:[%s284_s29] sm:$0xff]  ;;  %s1461_s29 = smov 15  }
  0x11   : > { %v295_v1 = vcombine.high %v293_v0, %v293_v0  ;;  %v298_v2 = vsel %vm297_vm0, %v293_v0, 0.0  ;;  %v310_v3 = vmul.f32 %v293_v0, %v293_v0 }
  0x13   : > { %v299_v4 = vsel %vm297_vm0, %v295_v1, 0.0  ;;  %v312_v5 = vcombine.high %v310_v3, %v310_v3  ;;  %v314_v6 = vsel %vm297_vm0, %v310_v3, 0.0 }
  0x14   : > { %v300_v7 = vadd.f32 %v299_v4, %v298_v2 }
  0x15   : > { %v315_v8 = vsel %vm297_vm0, %v312_v5, 0.0 }
  0x16   : > { %301 = vadd.xlane.f32.xlu0 %v300_v7  ;;  %v316_v9 = vadd.f32 %v315_v8, %v314_v6  ;;  %v1369_v8 = vld [vmem:[%s1683_s3 + $0x28] sm:$0xff] }
  0x1a   : > { %317 = vadd.xlane.f32.xlu0 %v316_v9 }
  0x86   : > { %v347_v34 = vpop.permute.xlu1 %346 }
  0x87   : > { %v354_v40 = vrot.slane %v347_v34, %v353_v36 }
  0x8a   : > { %v361_v38 = vpop.permute.xlu1 %360 }
  0x8b   : > { %v368_v42 = vrot.slane %v361_v38, %v353_v36 }
  0xa3   : > { %v302_v13 = vpop.xlane.xlu0 %301 }
  0xa4   : > { %v303_v14 = vrot.slane %v302_v13, 4 }
  0xa6   : > { %v304_v15 = vadd.f32 %v303_v14, %v302_v13  ;;  %v1350_v14 = vld [vmem:[%s1683_s3 + $0x8] sm:$0xff] }
  0xa7   : > { %v318_v16 = vpop.xlane.xlu0 %317 }
  0xa8   : > { %v305_v17 = vrot.slane %v304_v15, 2  ;;  %v319_v18 = vrot.slane %v318_v16, 4 }
  0xaa   : > { %v320_v19 = vadd.f32 %v319_v18, %v318_v16  ;;  %v306_v20 = vadd.f32 %v305_v17, %v304_v15 }
  0xac   : > { %v321_v21 = vrot.slane %v320_v19, 2  ;;  %v307_v22 = vrot.slane %v306_v20, 1 }
  0xae   : > { %v308_v23 = vadd.f32 %v307_v22, %v306_v20  ;;  %v322_v24 = vadd.f32 %v321_v21, %v320_v19 }
  0xb0   : > { %1406 = vpush %v308_v23  ;;  %v323_v25 = vrot.slane %v322_v24, 1  ;;  %v1373_v23 = vld [vmem:[%s1683_s3 + $0x30] sm:$0xff] }
  0xb2   : > { %v324_v26 = vadd.f32 %v323_v25, %v322_v24 }
  0xb4   : > { %1408 = vpush %v324_v26 }
  0xe1   : > { %s1407_s11 = spop %1406 }
  0xe2   : > { %s328_s12 = smul.f32 0.0009765625, %s1407_s11 }
  0xe4   : > { %s332_s13 = smul.f32 %s328_s12, %s328_s12  ;;  %v339_v35 = vstv %s328_s12  ;;  %s287_s12 = scalar_lea.vmem %s1686_s6, %s1697_s25 }
  0xe5   : > { %s1409_s14 = spop %1408  ;;  %v340_v37 = vsub.f32 %v293_v0, %v339_v35  ;;  %v1385_v55 = vld [vmem:[%s287_s12] ss:$0 sm:$0xff]  ;;  %s1389_s12 = sshll.u32 %s1697_s25, 4 }
  0xe6   : > { %s331_s15 = smul.f32 0.0009765625, %s1409_s14  ;;  %v1254_v56 = vmul.f32 %v1385_v55, %v1246_v54  ;;  %v1381_v55 = vld [vmem:[%s1683_s3 + $0x40] sm:$0xff] }
  0xe8   : > { %s333_s16 = ssub.f32 %s331_s15, %s332_s13  ;;  %v1256_v57 = vsel %vm1255_vm2, %v1254_v56, 0.0  ;;  %vm605_vm2 = vmand %vm415_vm7, %vm1555_vm4  ;;  %v1259_v56 = vld [vmem:[%s1685_s5] sm:$0xff]  ;;  %s292_s15 = scalar_lea.vmem %s1687_s7, %s1389_s12 }
  0xea   : > { %s334_s18 = smax.f32 %s1454_s17, %s333_s16 }
  0xeb   : > { %s335_s19 = sadd.f32 1e-05, %s334_s18 }
  0xed   : > { %v336_v27 = vstv %s335_s19 }
  0xee   : > { %1435 = vrsqrt.f32 %v336_v27 }
  0xf8   : > { %v1436_v28 = vpop.eup %1435 }
  0xf9   : > { %1410 = vpush %v1436_v28 }
 0x12a   : > { %s1411_s20 = spop %1410 }
 0x12b   : > { %v341_v39 = vstv %s1411_s20 }
 0x12c   : > { %v342_v41 = vmul.f32 %v341_v39, %v340_v37 }
 0x12e   : > { %v356_v43 = vmul.f32 %v354_v40, %v342_v41  ;;  %v1357_v40 = vld [vmem:[%s1683_s3 + $0x10] sm:$0xff]  ;;  %v1377_v41 = vld [vmem:[%s1683_s3 + $0x38] sm:$0xff] }
 0x130   : > { %v370_v44 = vadd.f32 %v368_v42, %v356_v43 }
 0x132   : > { %v371_v45 = vsub.f32 0.0, %v370_v44 }
 0x134   : > { %v372_v46 = vmul.f32 1.442695, %v371_v45 }
 0x136   : > { %1437 = vpow2.f32 %v372_v46 }
 0x140   : > { %v1438_v47 = vpop.eup %1437 }
 0x141   : > { %v374_v48 = vadd.f32 1.0, %v1438_v47 }
 0x143   : > { %1439 = vrcp.f32 %v374_v48 }
 0x14d   : > { %v1440_v50 = vpop.eup %1439 }
 0x14e   : > { %v377_v51 = vmul.f32 %v1440_v50, %v370_v44 }
 0x150   : > { %424 = vrot.lane.b32.xlu1 %v377_v51, %s1457_s21  ;;  %868 = vrot.lane.b32.xlu0 %v377_v51, %s1458_s22  ;;  %v406_v52 = vcombine.high %v377_v51, %v377_v51 }
 0x152   : > { %1366 = vmatprep.subr.msk.mxu0 %vm297_vm0, %v406_v52 }
 0x153   : > { %1367 = vmatpush1.msk.msra.mxu0 %vm297_vm0, %v377_v51 }
 0x154   : > { %408 = vrot.lane.b32.xlu1 %v377_v51, %s1459_s27  ;;  %963 = vrot.lane.b32.xlu0 %v406_v52, %s1460_s28 }
 0x155   : > { %1368 = vmatmul.mubr.msk.f32.vlgmr.msra.gmra.mrb[0].mxu0 %vm435_vm1, %v1365_v53 }
 0x156   : > { %952 = vmatprep.mubr.f32.mxu0 %v1456_v49 }
 0x158   : > { %598 = vrot.lane.b32.xlu0 %v406_v52, %s1461_s29  ;;  %870 = vrot.lane.b32.xlu1 %v406_v52, %s1458_s22 }
 0x15c   : > { %1060 = vrot.lane.b32.xlu0 %v406_v52, %s1462_s30  ;;  %426 = vrot.lane.b32.xlu1 %v406_v52, %s1457_s21 }
 0x160   : > { %695 = vrot.lane.b32.xlu0 %v406_v52, %s1463_s8  ;;  %961 = vrot.lane.b32.xlu1 %v377_v51, %s1460_s28 }
 0x164   : > { %1153 = vrot.lane.b32.xlu0 %v406_v52, %s1464_s9  ;;  %410 = vrot.lane.b32.xlu1 %v406_v52, %s1459_s27 }
 0x168   : > { %596 = vrot.lane.b32.xlu1 %v377_v51, %s1461_s29 }
 0x16c   : > { %1058 = vrot.lane.b32.xlu1 %v377_v51, %s1462_s30 }
 0x170   : > { %693 = vrot.lane.b32.xlu1 %v377_v51, %s1463_s8 }
 0x174   : > { %1151 = vrot.lane.b32.xlu1 %v377_v51, %s1464_s9 }
 0x198   : > { %1257 = vadd.xlane.f32.xlu1 %v1256_v57 }
 0x1c2   : > { %v425_v60 = vpop.permute.xlu1 %424  ;;  %v869_v0 = vpop.permute.xlu0 %868 }
 0x1c6   : > { %v409_v63 = vpop.permute.xlu1 %408  ;;  %v964_v9 = vpop.permute.xlu0 %963 }
 0x1ca   : > { %v871_v3 = vpop.permute.xlu1 %870  ;;  %v599_v20 = vpop.permute.xlu0 %598 }
 0x1cb   : > { %v873_v4 = vsel %vm872_vm3, %v869_v0, %v871_v3  ;;  %v874_v5 = vsel %vm872_vm3, %v871_v3, %v869_v0  ;;  %vm1062_vm3 = vcmp.lt.s32.totalorder %v1547_v58, 112 }
 0x1cc   : > { %v875_v6 = vsel %vm1555_vm4, %v873_v4, 0.0  ;;  %v876_v7 = vsel %vm1559_vm5, %v874_v5, 0.0 }
 0x1cd   : > { %1370 = vmatprep.subr.msk.mxu0 %vm297_vm0, %v876_v7 }
 0x1ce   : > { %v427_v10 = vpop.permute.xlu1 %426  ;;  %1371 = vmatpush1.msk.msra.mxu0 %vm297_vm0, %v875_v6  ;;  %v1061_v30 = vpop.permute.xlu0 %1060 }
 0x1cf   : > { %v430_v12 = vsel %vm428_vm6, %v427_v10, %v425_v60  ;;  %v429_v13 = vsel %vm428_vm6, %v425_v60, %v427_v10  ;;  %1372 = vmatmul.mubr.msk.f32.vlgmr.msra.gmra.mrb[0].mxu0 %vm435_vm1, %v1369_v8  ;;  %vm697_vm6 = vcmp.lt.s32.totalorder %v1547_v58, 1 }
 0x1d0   : > { %1351 = vmatprep.subr.msk.mxu1 %vm297_vm0, %v429_v13  ;;  %v431_v15 = vsel %vm415_vm7, %v430_v12, 0.0  ;;  %1049 = vmatprep.mubr.f32.mxu0 %v1456_v49  ;;  %vm1155_vm7 = vcmp.lt.s32.totalorder %v1547_v58, 111 }
 0x1d1   : > { %1352 = vmatpush1.msk.msra.mxu1 %vm297_vm0, %v431_v15 }
 0x1d2   : > { %v962_v17 = vpop.permute.xlu1 %961  ;;  %1353 = vmatmul.mubr.msk.f32.vlgmr.msra.gmra.mrb[0].mxu1 %vm435_vm1, %v1350_v14  ;;  %v696_v38 = vpop.permute.xlu0 %695 }
 0x1d3   : > { %v966_v18 = vsel %vm965_vm10, %v962_v17, %v964_v9  ;;  %v967_v19 = vsel %vm965_vm10, %v964_v9, %v962_v17  ;;  %589 = vmatprep.mubr.f32.mxu1 %v1456_v49  ;;  %vm1159_vm10 = vmand %vm969_vm9, %vm1559_vm5 }
 0x1d4   : > { %v972_v21 = vsel %vm1589_vm11, %v966_v18, 0.0  ;;  %v973_v22 = vsel %vm971_vm12, %v967_v19, 0.0 }
 0x1d5   : > { %1374 = vmatprep.subr.msk.mxu0 %vm297_vm0, %v973_v22 }
 0x1d6   : > { %v411_v24 = vpop.permute.xlu1 %410  ;;  %1375 = vmatpush1.msk.msra.mxu0 %vm297_vm0, %v972_v21  ;;  %v1154_v48 = vpop.permute.xlu0 %1153 }
 0x1d7   : > { %v413_v25 = vsel %vm412_vm13, %v409_v63, %v411_v24  ;;  %v414_v26 = vsel %vm412_vm13, %v411_v24, %v409_v63  ;;  %1376 = vmatmul.mubr.msk.f32.vlgmr.msra.gmra.mrb[0].mxu0 %vm435_vm1, %v1373_v23 }
 0x1d8   : > { %v421_v27 = vsel %vm419_vm14, %v414_v26, 0.0  ;;  %v422_v28 = vsel %vm1574_vm8, %v413_v25, 0.0  ;;  %1142 = vmatprep.mubr.f32.mxu0 %v1456_v49 }
 0x1d9   : > { %1354 = vmatprep.subr.msk.mxu1 %vm297_vm0, %v422_v28 }
 0x1da   : > { %1355 = vmatpush1.msk.msra.mxu1 %vm297_vm0, %v421_v27  ;;  %v597_v31 = vpop.permute.xlu1 %596 }
 0x1db   : > { %v601_v32 = vsel %vm600_vm15, %v597_v31, %v599_v20  ;;  %v602_v33 = vsel %vm600_vm15, %v599_v20, %v597_v31  ;;  %1356 = vmatmul.mubr.msk.f32.vlgmr.msra.gmra.mrb[0].mxu1 %vm435_vm1, %v423_v29 }
 0x1dc   : > { %v607_v34 = vsel %vm605_vm2, %v602_v33, 0.0  ;;  %v608_v35 = vsel %vm1559_vm5, %v601_v32, 0.0  ;;  %684 = vmatprep.mubr.f32.mxu1 %v1456_v49 }
 0x1dd   : > { %1358 = vmatprep.subr.msk.mxu1 %vm297_vm0, %v608_v35 }
 0x1de   : > { %1359 = vmatpush1.msk.msra.mxu1 %vm297_vm0, %v607_v34  ;;  %v1059_v36 = vpop.permute.xlu1 %1058 }
 0x1df   : > { %v1064_v37 = vsel %vm1062_vm3, %v1061_v30, %v1059_v36  ;;  %v1063_v42 = vsel %vm1062_vm3, %v1059_v36, %v1061_v30 }
 0x1e0   : > { %v1066_v39 = vsel %vm969_vm9, %v1064_v37, 0.0 }
 0x1e1   : > { %1378 = vmatprep.subr.msk.mxu0 %vm297_vm0, %v1066_v39 }
 0x1e2   : > { %v694_v43 = vpop.permute.xlu1 %693  ;;  %1379 = vmatpush1.msk.msra.mxu0 %vm297_vm0, %v1063_v42 }
 0x1e3   : > { %v698_v44 = vsel %vm697_vm6, %v694_v43, %v696_v38  ;;  %v699_v45 = vsel %vm697_vm6, %v696_v38, %v694_v43  ;;  %1360 = vmatmul.mubr.msk.f32.vlgmr.msra.gmra.mrb[0].mxu1 %vm435_vm1, %v1357_v40  ;;  %1380 = vmatmul.mubr.msk.f32.vlgmr.msra.gmra.mrb[0].mxu0 %vm435_vm1, %v1377_v41 }
 0x1e4   : > { %v700_v46 = vsel %vm1589_vm11, %v699_v45, 0.0  ;;  %v701_v47 = vsel %vm1574_vm8, %v698_v44, 0.0  ;;  %777 = vmatprep.mubr.f32.mxu1 %v1456_v49  ;;  %1237 = vmatprep.mubr.f32.mxu0 %v1456_v49  ;;  %v1361_v49 = vld [vmem:[%s1683_s3 + $0x18] sm:$0xff] }
 0x1e5   : > { %1362 = vmatprep.subr.msk.mxu1 %vm297_vm0, %v701_v47 }
 0x1e6   : > { %1363 = vmatpush1.msk.msra.mxu1 %vm297_vm0, %v700_v46  ;;  %v1152_v50 = vpop.permute.xlu1 %1151 }
 0x1e7   : > { %v1156_v51 = vsel %vm1155_vm7, %v1152_v50, %v1154_v48  ;;  %v1157_v52 = vsel %vm1155_vm7, %v1154_v48, %v1152_v50 }
 0x1e8   : > { %v1160_v53 = vsel %vm1555_vm4, %v1156_v51, 0.0  ;;  %v1161_v54 = vsel %vm1159_vm10, %v1157_v52, 0.0 }
 0x1e9   : > { %1382 = vmatprep.subr.msk.mxu0 %vm297_vm0, %v1161_v54 }
 0x1ea   : > { %1383 = vmatpush1.msk.msra.mxu0 %vm297_vm0, %v1160_v53 }
 0x1eb   : > { %1364 = vmatmul.mubr.msk.f32.vlgmr.msra.gmra.mrb[0].mxu1 %vm435_vm1, %v1361_v49  ;;  %1384 = vmatmul.mubr.msk.f32.vlgmr.msra.gmra.mrb[0].mxu0 %vm435_vm1, %v1381_v55 }
 0x225   : > { %v1258_v57 = vpop.xlane.xlu1 %1257 }
 0x226   : > { %v1260_v58 = vadd.f32 %v1259_v56, %v1258_v57 }
 0x228   : > { %v1261_v59 = vsub.f32 0.0, %v1260_v58 }
 0x22a   : > { %v1262_v60 = vmul.f32 1.442695, %v1261_v59 }
 0x22c   : > { %1441 = vpow2.f32 %v1262_v60 }
 0x236   : > { %v1442_v61 = vpop.eup %1441 }
 0x237   : > { %v1264_v62 = vadd.f32 1.0, %v1442_v61 }
 0x239   : > { %1443 = vrcp.f32 %v1264_v62 }
 0x243   : > { %v1444_v63 = vpop.eup %1443 }
 0x244   : > { %v1267_v0 = vmul.f32 %v1444_v63, %v1260_v58 }
 0x246   : > { %1270 = vperm.xlu0 %1433, %v1267_v0  }
 0x2be   : > { %v779_v1 = vpop.f32.mrb[0].mxu1  ;;  %v1239_v2 = vpop.f32.mrb[0].mxu0 }
 0x2bf   : > { %v1390_v3 = vadd.f32 %v1239_v2, %v779_v1  ;;  %v781_v4 = vpop.f32.mrb[1].mxu1  ;;  %v1241_v5 = vpop.f32.mrb[1].mxu0 }
 0x2c0   : > { %v1391_v6 = vadd.f32 %v1241_v5, %v781_v4 }
 0x2c5   : > { %v1271_v7 = vpop.permute.xlu0 %1270 }
 0x2c6   : > { %v1273_v8 = vadd.f32 %v1390_v3, %v1271_v7  ;;  %v1274_v9 = vadd.f32 %v1391_v6, %v1271_v7 }
 0x2c8   : > { %1275 = vst [vmem:[%s292_s15] sm:$0xff] %v1273_v8  ;;  %1276 = vst [vmem:[%s292_s15 + $0x8] sm:$0xff] %v1274_v9 }
 0x2c9 PF: > { %s17_s24 = sadd.s32 1, %s1451_s24  }
 0x2ca   : > { %p14_p4 = scmp.ge.s32.totalorder %s17_s24, 4  }
 0x2cc   :  { %16 = sbr.rel (!%p14_p4) target bundleno = 1 (0x1), region = 89 }

</bundles_post_ra>
